<compile_context>
chip_gen: v7x
topology: tpu7x:2x2x1
jax: 0.10.0
libtpu: 0.0.40
codegen_flags: <defaults>
</compile_context>

<pallas_src>
import functools

import jax
import jax.numpy as jnp
from jax import lax
from jax.experimental import pallas as pl
from jax.experimental.pallas import tpu as pltpu


def _rel_cls_kernel(ids_ref, seq_ref, w_ref, b_ref, out_ref, *,
                    ent1_start_id, ent1_end_id, ent2_start_id, ent2_end_id):
    ids = ids_ref[...]                          # (TB, S) int32, lane-dense
    seq = seq_ref[...]                          # (TB, S, H) f32 or bf16
    TB, S = ids.shape
    H = seq.shape[-1]

    pos = lax.broadcasted_iota(jnp.int32, (TB, S), 1)
    sentinel = jnp.int32(S)

    def first_pos(token_id):
        # first occurrence per row; == S when the marker is absent
        return jnp.min(jnp.where(ids == token_id, pos, sentinel),
                       axis=1, keepdims=True)                       # (TB, 1)

    sp1, ep1 = first_pos(ent1_start_id), first_pos(ent1_end_id)
    sp2, ep2 = first_pos(ent2_start_id), first_pos(ent2_end_id)
    has1 = jnp.logical_and(sp1 < sentinel, ep1 < sentinel)          # (TB, 1)
    has2 = jnp.logical_and(sp2 < sentinel, ep2 < sentinel)

    # tokens strictly between the start and end markers ({0,1} f32 masks)
    m1 = jnp.logical_and(pos > sp1, pos < ep1).astype(jnp.float32)  # (TB, S)
    m2 = jnp.logical_and(pos > sp2, pos < ep2).astype(jnp.float32)

    cnt1 = jnp.sum(m1, axis=1, keepdims=True)                       # (TB, 1)
    cnt2 = jnp.sum(m2, axis=1, keepdims=True)
    # Per-row f32 normalization applied AFTER the matmul (O(TB) work).
    # missing markers -> 0; present-but-empty span -> 1/0 = inf -> 0*inf = NaN,
    # matching torch .mean() of an empty slice.
    inv1 = jnp.where(has1, 1.0 / cnt1, 0.0)
    inv2 = jnp.where(has2, 1.0 / cnt2, 0.0)

    # Reassociated classifier: single dense projection. seq is the streamed
    # MXU LHS (8 rows per push); the tiny (H, 2) RHS stays resident; f32 accum.
    w = w_ref[...].astype(seq.dtype)                                # (H, 2)
    proj = jnp.dot(seq.reshape(TB * S, H), w,
                   preferred_element_type=jnp.float32)              # (TB*S, 2)
    proj = proj.reshape(TB, S, 2)

    # Masked pooling on the tiny projection (VPU mul + sublane-reduce over S).
    p1 = jnp.sum(proj * m1[:, :, None], axis=1)                     # (TB, 2)
    p2 = jnp.sum(proj * m2[:, :, None], axis=1)                     # (TB, 2)

    # dropout: identity (eval mode).
    score = p1[:, 0:1] * inv1 + p2[:, 1:2] * inv2 + b_ref[...]      # (TB, 1)
    out_ref[...] = jnp.transpose(score)[None]                       # (1, 1, TB)


def relation_classifier_forward(input_ids, sequence_output, cls_weight, cls_bias,
                                ent1_start_id, ent1_end_id,
                                ent2_start_id, ent2_end_id,
                                *, block_rows=None, compute_dtype=None):
    """input_ids: [B, S] int; sequence_output: [B, S, H] float;
       cls_weight: [1, 2H] (torch nn.Linear(2H, 1) layout); cls_bias: [1].
       compute_dtype=jnp.bfloat16 halves streamed HBM bytes (f32 accumulation).
       Returns logits [B] float32."""
    B, S = input_ids.shape
    H = sequence_output.shape[-1]

    seq = sequence_output
    if compute_dtype is not None:
        seq = seq.astype(compute_dtype)
    itemsize = jnp.dtype(seq.dtype).itemsize

    # --- generation-aware VMEM budget (v5e/v6e: 128 MiB, v7x: 64 MiB) -------
    try:
        info = pltpu.get_tpu_info()
        vmem_cap = int(getattr(info, "vmem_capacity_bytes", 128 * 1024 * 1024))
    except Exception:
        vmem_cap = 128 * 1024 * 1024
    vmem_limit = min((vmem_cap * 3) // 4, 110 * 1024 * 1024)

    # --- batch-block sizing: largest TB (multiple of 8) inside the budget ---
    per_row = S * (2 * H * itemsize          # double-buffered hidden-state tile
                   + 2 * 4                    # double-buffered ids tile
                   + 128 * 4                  # f32 projection tile (lane-padded)
                   + 8 * 4)                   # masks / iota / temporaries
    if block_rows is None:
        budget = (vmem_limit * 4) // 5
        block_rows = max(8, min((budget // per_row) // 8 * 8, 1024))
    tb = max(8, ((int(block_rows) + 7) // 8) * 8)     # (8, 128) tiling rule
    tb = min(tb, ((B + 7) // 8) * 8)
    nblk = pl.cdiv(B, tb)
    # prefer an even block count so v7x's two TensorCores stay load-balanced
    if nblk > 1 and nblk % 2 == 1 and tb % 16 == 0 and pl.cdiv(B, tb // 2) % 2 == 0:
        tb //= 2
        nblk = pl.cdiv(B, tb)
    b_pad = nblk * tb

    ids = input_ids.astype(jnp.int32)
    if b_pad != B:
        pad = b_pad - B
        ids = jnp.pad(ids, ((0, pad), (0, 0)), constant_values=-1)  # no markers
        seq = jnp.pad(seq, ((0, pad), (0, 0), (0, 0)))

    # nn.Linear(2H, 1).weight is (1, 2H): first H multiply ent1, second H ent2.
    w_t = cls_weight.reshape(2, H).astype(jnp.float32).T            # (H, 2)
    b = cls_bias.reshape(1, 1).astype(jnp.float32)

    kernel = functools.partial(
        _rel_cls_kernel,
        ent1_start_id=int(ent1_start_id), ent1_end_id=int(ent1_end_id),
        ent2_start_id=int(ent2_start_id), ent2_end_id=int(ent2_end_id))

    out = pl.pallas_call(
        kernel,
        out_shape=jax.ShapeDtypeStruct((nblk, 1, tb), jnp.float32),
        grid_spec=pltpu.PrefetchScalarGridSpec(
            num_scalar_prefetch=0,
            grid=(nblk,),
            in_specs=[
                pl.BlockSpec((tb, S), lambda i: (i, 0)),        # ids rows
                pl.BlockSpec((tb, S, H), lambda i: (i, 0, 0)),  # hidden states
                pl.BlockSpec((H, 2), lambda i: (0, 0)),         # classifier weights
                pl.BlockSpec((1, 1), lambda i: (0, 0)),         # bias
            ],
            out_specs=pl.BlockSpec((1, 1, tb), lambda i: (i, 0, 0)),
        ),
        compiler_params=pltpu.CompilerParams(
            dimension_semantics=("parallel",),
            vmem_limit_bytes=int(vmem_limit)),
        cost_estimate=pl.CostEstimate(
            flops=int(4 * b_pad * S * H),
            transcendentals=0,
            bytes_accessed=int(b_pad * S * (H * itemsize + 4) + b_pad * 4)),
    )(ids, seq, w_t, b)

    return out.reshape(b_pad)[:B]


def reference_forward(input_ids, sequence_output, cls_weight, cls_bias,
                      e1s, e1e, e2s, e2e):
    """Pure-numpy reference mirroring the PyTorch per-row loop."""
    import numpy as np
    ids = np.array(input_ids)
    seq = np.array(sequence_output, dtype=np.float32)
    W = np.array(cls_weight, dtype=np.float32)
    b = np.array(cls_bias, dtype=np.float32)
    B, S, H = seq.shape
    logits = []
    for i in range(B):
        tokens = ids[i]
        reps = seq[i]

        def span(sid, eid):
            sp = np.nonzero(tokens == sid)[0]
            ep = np.nonzero(tokens == eid)[0]
            if len(sp) > 0 and len(ep) > 0:
                return reps[sp[0] + 1:ep[0]].mean(axis=0)
            return np.zeros(H, dtype=np.float32)

        e1 = span(e1s, e1e)
        e2 = span(e2s, e2e)
        comb = np.concatenate([e1, e2])
        logits.append(comb @ W[0] + b[0])
    return np.array(logits, dtype=np.float32)


if __name__ == "__main__":
    import numpy as np

    S, H, VOCAB = 16, 32, 64
    ENT1_START, ENT1_END, ENT2_START, ENT2_END = 60, 61, 62, 63

    key = jax.random.PRNGKey(0)
    k_ids, k_ids2, k_emb, k_enc, k_w, k_b = jax.random.split(key, 6)

    # synthetic deterministic "transformer" (plain-JAX glue, outside the kernel)
    emb_table = jax.random.normal(k_emb, (VOCAB, H), dtype=jnp.float32) * 0.1
    W_enc = jax.random.normal(k_enc, (H, H), dtype=jnp.float32) * 0.1

    def encode(token_ids):
        return jnp.tanh(emb_table[token_ids] @ W_enc)       # [B, S, H] f32

    cls_weight = jax.random.normal(k_w, (1, 2 * H), dtype=jnp.float32) * 0.05
    cls_bias = jax.random.normal(k_b, (1,), dtype=jnp.float32) * 0.05

    # ----- test 1: B=4, single block, f32 streaming --------------------------
    B = 4
    ids = np.array(jax.random.randint(k_ids, (B, S), 0, ENT1_START, dtype=jnp.int32))
    ids[0, 2], ids[0, 5] = ENT1_START, ENT1_END
    ids[0, 8], ids[0, 11] = ENT2_START, ENT2_END
    ids[1, 1], ids[1, 4] = ENT1_START, ENT1_END
    ids[1, 6], ids[1, 10] = ENT2_START, ENT2_END
    ids[2, 3], ids[2, 7] = ENT1_START, ENT1_END          # ent2 missing -> zeros
    ids[3, 2], ids[3, 4] = ENT1_START, ENT1_END
    ids[3, 10], ids[3, 14] = ENT2_START, ENT2_END
    ids = jnp.asarray(ids, dtype=jnp.int32)
    seq = encode(ids)

    logits = relation_classifier_forward(
        ids, seq, cls_weight, cls_bias,
        ENT1_START, ENT1_END, ENT2_START, ENT2_END)
    logits = jax.block_until_ready(logits)
    ref = reference_forward(ids, seq, cls_weight, cls_bias,
                            ENT1_START, ENT1_END, ENT2_START, ENT2_END)
    np.testing.assert_allclose(np.asarray(logits), ref, rtol=1e-5, atol=1e-5)

    # ----- test 1b: same inputs, bf16 hidden-state streaming -----------------
    logits_bf16 = relation_classifier_forward(
        ids, seq, cls_weight, cls_bias,
        ENT1_START, ENT1_END, ENT2_START, ENT2_END,
        compute_dtype=jnp.bfloat16)
    logits_bf16 = jax.block_until_ready(logits_bf16)
    np.testing.assert_allclose(np.asarray(logits_bf16), ref, rtol=5e-2, atol=3e-2)

    # ----- test 2: B=12, two blocks + batch padding (block_rows=8) -----------
    B2 = 12
    ids2 = np.array(jax.random.randint(k_ids2, (B2, S), 0, ENT1_START, dtype=jnp.int32))
    for i in range(B2):
        ids2[i, 1 + (i % 3)] = ENT1_START
        ids2[i, 5 + (i % 4)] = ENT1_END
        if i % 5 != 4:                                   # some rows missing ent2
            ids2[i, 9] = ENT2_START
            ids2[i, 12 + (i % 3)] = ENT2_END
    ids2 = jnp.asarray(ids2, dtype=jnp.int32)
    seq2 = encode(ids2)

    logits2 = relation_classifier_forward(
        ids2, seq2, cls_weight, cls_bias,
        ENT1_START, ENT1_END, ENT2_START, ENT2_END,
        block_rows=8)                                    # grid=(2,), padded to 16 rows
    logits2 = jax.block_until_ready(logits2)
    ref2 = reference_forward(ids2, seq2, cls_weight, cls_bias,
                             ENT1_START, ENT1_END, ENT2_START, ENT2_END)
    np.testing.assert_allclose(np.asarray(logits2), ref2, rtol=1e-5, atol=1e-5)

    print("KERNEL_OK")
</pallas_src>

<mosaic_0001>
module attributes {stable_mosaic.version = 11 : i64} {
  func.func @_rel_cls_kernel(%arg0: i32, %arg1: memref<8x16xi32, #tpu.memory_space<vmem>>, %arg2: memref<8x16x32xf32, #tpu.memory_space<vmem>>, %arg3: memref<32x2xf32, #tpu.memory_space<vmem>>, %arg4: memref<1x1xf32, #tpu.memory_space<vmem>>, %arg5: memref<1x1x8xf32, #tpu.memory_space<vmem>>) attributes {dimension_semantics = [#tpu.dimension_semantics<parallel>], iteration_bounds = array<i64: 1>, scalar_prefetch = 0 : i64, scratch_operands = 0 : i64, tpu.core_type = #tpu.core_type<tc>, window_params = [{transform_indices = @transform_0, window_bounds = array<i64: 8, 16>}, {transform_indices = @transform_1, window_bounds = array<i64: 8, 16, 32>}, {pipeline_mode = #tpu.pipeline_mode<synchronous>, transform_indices = @transform_2, window_bounds = array<i64: 32, 2>}, {pipeline_mode = #tpu.pipeline_mode<synchronous>, transform_indices = @transform_3, window_bounds = array<i64: 1, 1>}, {transform_indices = @transform_4, window_bounds = array<i64: 1, 1, 8>}]} {
    %c0 = arith.constant 0 : index
    %c0_0 = arith.constant 0 : index
    %0 = vector.load %arg1[%c0, %c0_0] : memref<8x16xi32, #tpu.memory_space<vmem>>, vector<8x16xi32>
    %c0_1 = arith.constant 0 : index
    %c0_2 = arith.constant 0 : index
    %c0_3 = arith.constant 0 : index
    %1 = vector.load %arg2[%c0_1, %c0_2, %c0_3] : memref<8x16x32xf32, #tpu.memory_space<vmem>>, vector<8x16x32xf32>
    %2 = tpu.iota {dimensions = array<i32: 1>} : vector<8x16xi32>
    %c60_i32 = arith.constant 60 : i32
    %3 = vector.broadcast %c60_i32 : i32 to vector<8x16xi32>
    %4 = arith.cmpi eq, %0, %3 : vector<8x16xi32>
    %c16_i32 = arith.constant 16 : i32
    %5 = vector.broadcast %c16_i32 : i32 to vector<8x16xi32>
    %6 = arith.select %4, %2, %5 : vector<8x16xi1>, vector<8x16xi32>
    %cst = arith.constant dense<2147483647> : vector<8xi32>
    %7 = vector.multi_reduction <minsi>, %6, %cst [1] : vector<8x16xi32> to vector<8xi32>
    %8 = vector.shape_cast %7 : vector<8xi32> to vector<8x1xi32>
    %c61_i32 = arith.constant 61 : i32
    %9 = vector.broadcast %c61_i32 : i32 to vector<8x16xi32>
    %10 = arith.cmpi eq, %0, %9 : vector<8x16xi32>
    %c16_i32_4 = arith.constant 16 : i32
    %11 = vector.broadcast %c16_i32_4 : i32 to vector<8x16xi32>
    %12 = arith.select %10, %2, %11 : vector<8x16xi1>, vector<8x16xi32>
    %cst_5 = arith.constant dense<2147483647> : vector<8xi32>
    %13 = vector.multi_reduction <minsi>, %12, %cst_5 [1] : vector<8x16xi32> to vector<8xi32>
    %14 = vector.shape_cast %13 : vector<8xi32> to vector<8x1xi32>
    %c62_i32 = arith.constant 62 : i32
    %15 = vector.broadcast %c62_i32 : i32 to vector<8x16xi32>
    %16 = arith.cmpi eq, %0, %15 : vector<8x16xi32>
    %c16_i32_6 = arith.constant 16 : i32
    %17 = vector.broadcast %c16_i32_6 : i32 to vector<8x16xi32>
    %18 = arith.select %16, %2, %17 : vector<8x16xi1>, vector<8x16xi32>
    %cst_7 = arith.constant dense<2147483647> : vector<8xi32>
    %19 = vector.multi_reduction <minsi>, %18, %cst_7 [1] : vector<8x16xi32> to vector<8xi32>
    %20 = vector.shape_cast %19 : vector<8xi32> to vector<8x1xi32>
    %c63_i32 = arith.constant 63 : i32
    %21 = vector.broadcast %c63_i32 : i32 to vector<8x16xi32>
    %22 = arith.cmpi eq, %0, %21 : vector<8x16xi32>
    %c16_i32_8 = arith.constant 16 : i32
    %23 = vector.broadcast %c16_i32_8 : i32 to vector<8x16xi32>
    %24 = arith.select %22, %2, %23 : vector<8x16xi1>, vector<8x16xi32>
    %cst_9 = arith.constant dense<2147483647> : vector<8xi32>
    %25 = vector.multi_reduction <minsi>, %24, %cst_9 [1] : vector<8x16xi32> to vector<8xi32>
    %26 = vector.shape_cast %25 : vector<8xi32> to vector<8x1xi32>
    %c16_i32_10 = arith.constant 16 : i32
    %27 = vector.broadcast %c16_i32_10 : i32 to vector<8x1xi32>
    %28 = arith.cmpi slt, %8, %27 : vector<8x1xi32>
    %c16_i32_11 = arith.constant 16 : i32
    %29 = vector.broadcast %c16_i32_11 : i32 to vector<8x1xi32>
    %30 = arith.cmpi slt, %14, %29 : vector<8x1xi32>
    %31 = arith.andi %28, %30 : vector<8x1xi1>
    %c16_i32_12 = arith.constant 16 : i32
    %32 = vector.broadcast %c16_i32_12 : i32 to vector<8x1xi32>
    %33 = arith.cmpi slt, %20, %32 : vector<8x1xi32>
    %c16_i32_13 = arith.constant 16 : i32
    %34 = vector.broadcast %c16_i32_13 : i32 to vector<8x1xi32>
    %35 = arith.cmpi slt, %26, %34 : vector<8x1xi32>
    %36 = arith.andi %33, %35 : vector<8x1xi1>
    %37 = vector.broadcast %8 : vector<8x1xi32> to vector<8x16xi32>
    %38 = arith.cmpi sgt, %2, %37 : vector<8x16xi32>
    %39 = vector.broadcast %14 : vector<8x1xi32> to vector<8x16xi32>
    %40 = arith.cmpi slt, %2, %39 : vector<8x16xi32>
    %41 = arith.andi %38, %40 : vector<8x16xi1>
    %42 = arith.extui %41 : vector<8x16xi1> to vector<8x16xi32>
    %43 = arith.sitofp %42 : vector<8x16xi32> to vector<8x16xf32>
    %44 = vector.broadcast %20 : vector<8x1xi32> to vector<8x16xi32>
    %45 = arith.cmpi sgt, %2, %44 : vector<8x16xi32>
    %46 = vector.broadcast %26 : vector<8x1xi32> to vector<8x16xi32>
    %47 = arith.cmpi slt, %2, %46 : vector<8x16xi32>
    %48 = arith.andi %45, %47 : vector<8x16xi1>
    %49 = arith.extui %48 : vector<8x16xi1> to vector<8x16xi32>
    %50 = arith.sitofp %49 : vector<8x16xi32> to vector<8x16xf32>
    %cst_14 = arith.constant dense<0.000000e+00> : vector<8xf32>
    %51 = vector.multi_reduction <add>, %43, %cst_14 [1] : vector<8x16xf32> to vector<8xf32>
    %52 = vector.shape_cast %51 : vector<8xf32> to vector<8x1xf32>
    %cst_15 = arith.constant dense<0.000000e+00> : vector<8xf32>
    %53 = vector.multi_reduction <add>, %50, %cst_15 [1] : vector<8x16xf32> to vector<8xf32>
    %54 = vector.shape_cast %53 : vector<8xf32> to vector<8x1xf32>
    %cst_16 = arith.constant 1.000000e+00 : f32
    %55 = vector.broadcast %cst_16 : f32 to vector<8x1xf32>
    %56 = arith.divf %55, %52 : vector<8x1xf32>
    %cst_17 = arith.constant 0.000000e+00 : f32
    %57 = vector.broadcast %cst_17 : f32 to vector<8x1xf32>
    %58 = arith.select %31, %56, %57 : vector<8x1xi1>, vector<8x1xf32>
    %cst_18 = arith.constant 1.000000e+00 : f32
    %59 = vector.broadcast %cst_18 : f32 to vector<8x1xf32>
    %60 = arith.divf %59, %54 : vector<8x1xf32>
    %cst_19 = arith.constant 0.000000e+00 : f32
    %61 = vector.broadcast %cst_19 : f32 to vector<8x1xf32>
    %62 = arith.select %36, %60, %61 : vector<8x1xi1>, vector<8x1xf32>
    %c0_20 = arith.constant 0 : index
    %c0_21 = arith.constant 0 : index
    %63 = vector.load %arg3[%c0_20, %c0_21] : memref<32x2xf32, #tpu.memory_space<vmem>>, vector<32x2xf32>
    %64 = vector.shape_cast %1 : vector<8x16x32xf32> to vector<128x32xf32>
    %cst_22 = arith.constant dense<0.000000e+00> : vector<128x2xf32>
    %65 = tpu.matmul %64, %63, %cst_22 {dimension_numbers = #tpu.dot_dimension_numbers<[1], [0], [0], [1], [0, 0, 1, 1], [], []>} : vector<128x32xf32>, vector<32x2xf32>, vector<128x2xf32> -> vector<128x2xf32>
    %66 = vector.shape_cast %65 : vector<128x2xf32> to vector<8x16x2xf32>
    %67 = vector.shape_cast %43 : vector<8x16xf32> to vector<8x16x1xf32>
    %68 = vector.broadcast %67 : vector<8x16x1xf32> to vector<8x16x2xf32>
    %69 = arith.mulf %66, %68 : vector<8x16x2xf32>
    %cst_23 = arith.constant dense<0.000000e+00> : vector<8x2xf32>
    %70 = vector.multi_reduction <add>, %69, %cst_23 [1] : vector<8x16x2xf32> to vector<8x2xf32>
    %71 = vector.shape_cast %50 : vector<8x16xf32> to vector<8x16x1xf32>
    %72 = vector.broadcast %71 : vector<8x16x1xf32> to vector<8x16x2xf32>
    %73 = arith.mulf %66, %72 : vector<8x16x2xf32>
    %cst_24 = arith.constant dense<0.000000e+00> : vector<8x2xf32>
    %74 = vector.multi_reduction <add>, %73, %cst_24 [1] : vector<8x16x2xf32> to vector<8x2xf32>
    %75 = vector.extract_strided_slice %70 {offsets = [0, 0], sizes = [8, 1], strides = [1, 1]} : vector<8x2xf32> to vector<8x1xf32>
    %76 = arith.mulf %75, %58 : vector<8x1xf32>
    %77 = vector.extract_strided_slice %74 {offsets = [0, 1], sizes = [8, 1], strides = [1, 1]} : vector<8x2xf32> to vector<8x1xf32>
    %78 = arith.mulf %77, %62 : vector<8x1xf32>
    %79 = arith.addf %76, %78 : vector<8x1xf32>
    %c0_25 = arith.constant 0 : index
    %c0_26 = arith.constant 0 : index
    %80 = vector.load %arg4[%c0_25, %c0_26] : memref<1x1xf32, #tpu.memory_space<vmem>>, vector<1x1xf32>
    %81 = vector.broadcast %80 : vector<1x1xf32> to vector<8x1xf32>
    %82 = arith.addf %79, %81 : vector<8x1xf32>
    %83 = tpu.transpose %82, [1, 0] : vector<8x1xf32> -> vector<1x8xf32>
    %84 = vector.shape_cast %83 : vector<1x8xf32> to vector<1x1x8xf32>
    %c0_27 = arith.constant 0 : index
    %c0_28 = arith.constant 0 : index
    %c0_29 = arith.constant 0 : index
    %85 = vector.load %arg5[%c0_27, %c0_28, %c0_29] : memref<1x1x8xf32, #tpu.memory_space<vmem>>, vector<1x1x8xf32>
    tpu.vector_store %arg5[%c0_27, %c0_28, %c0_29], %84 {strides = array<i32>} : memref<1x1x8xf32, #tpu.memory_space<vmem>>, vector<1x1x8xf32>,
    return
  }
  func.func @transform_0(%arg0: i32) -> (i32, i32) {
    %c0_i32 = arith.constant 0 : i32
    %c0_i32_0 = arith.constant 0 : i32
    return %arg0, %c0_i32 : i32, i32
  }
  func.func @transform_1(%arg0: i32) -> (i32, i32, i32) {
    %c0_i32 = arith.constant 0 : i32
    %c0_i32_0 = arith.constant 0 : i32
    %c0_i32_1 = arith.constant 0 : i32
    return %arg0, %c0_i32, %c0_i32_0 : i32, i32, i32
  }
  func.func @transform_2(%arg0: i32) -> (i32, i32) {
    %c0_i32 = arith.constant 0 : i32
    %c0_i32_0 = arith.constant 0 : i32
    %c0_i32_1 = arith.constant 0 : i32
    return %c0_i32, %c0_i32_0 : i32, i32
  }
  func.func @transform_3(%arg0: i32) -> (i32, i32) {
    %c0_i32 = arith.constant 0 : i32
    %c0_i32_0 = arith.constant 0 : i32
    %c0_i32_1 = arith.constant 0 : i32
    return %c0_i32, %c0_i32_0 : i32, i32
  }
  func.func @transform_4(%arg0: i32) -> (i32, i32, i32) {
    %c0_i32 = arith.constant 0 : i32
    %c0_i32_0 = arith.constant 0 : i32
    %c0_i32_1 = arith.constant 0 : i32
    return %arg0, %c0_i32, %c0_i32_0 : i32, i32, i32
  }
}

</mosaic_0001>

<bundles_post_ra>
// kernel: tpu_custom_call.1
= control target key start
LH: loop header
LB: loop body
LE: loop exit
PB: predicated region body
PF: predicated region fallthrough
CT: control target
= control target key end

     0   :  { %s1390_s0 = inlined_call_operand.hbm [shape: s32[8,16], index: 0, kind: input, shape index: {}]   ;;  %s1391_s1 = inlined_call_operand.hbm [shape: f32[8,16,32], index: 1, kind: input, shape index: {}]   ;;  %s1392_s2 = inlined_call_operand.hbm [shape: f32[32,2], index: 2, kind: input, shape index: {}]   ;;  %s1393_s3 = inlined_call_operand.<no memory space> [shape: f32[1,1], index: 3, kind: input, shape index: {}]   ;;  %s1394_s4 = inlined_call_operand.hbm [shape: f32[1,1,8], index: 4, kind: output, shape index: {}]  }
   0x1   :  { %v9_v0 = vstv %s1393_s3 }
   0x2   :  { %10 = vst [vmem:[#allocation2] sm:$0x1] %v9_v0 }
   0x3   :  { %11 = vsyncpa [#allocation4], 0 }
   0x4   :  { %12 = vsyncpa [#allocation7], 0 }
   0x5   :  { %13 = vsyncpa [#allocation5], 0  ;;  %s1098_s17 = smov [#allocation6]   ;;  %s1004_s21 = scalar_lea.hbm %s1391_s1, 2048 }
   0x6   :  { %s29_s18 = sshll.u32 %s1098_s17, 4  ;;  %p1005_p0 = scmp.ne.s32.totalorder %s1391_s1, %s1004_s21  ;;  %s30_s18 = int_to_ptr.vmem [resolvable:$true] %s29_s18 }
   0x7   :  { %p1008_p1 = scmp.lt.u32.totalorder %s1004_s21, %s1391_s1 }
   0x9   :  { %p1010_p2 = pnand %p1008_p1, %p1005_p0 }
   0xb   :  { %1013 = shalt.err (!%p1010_p2)
}
   0xc   :  { %s1014_s3 = scalar_lea.vmem %s30_s18, 2048  ;;  %p1019_p4 = scmp.lt.s32.totalorder %s30_s18, %s30_s18 }
   0xd   :  { %p1015_p3 = scmp.ne.s32.totalorder %s30_s18, %s1014_s3  ;;  %p1020_p5 = scmp.lt.s32.totalorder %s1014_s3, %s1014_s3 }
   0xf   :  { %p1021_p6 = por %p1020_p5, %p1019_p4 }
  0x11   :  { %p1022_p7 = pnand %p1021_p6, %p1015_p3 }
  0x13   :  { %1025 = shalt.err (!%p1022_p7)
}
  0x14   :  { %s1099_s26 = smov 128   ;;  %s1100_s27 = smov 8  }
  0x15   :  { %35 = dma.hbm_to_vmem [thread:$0]  %s1391_s1, 2048, %s30_s18, [#allocation7], %s1099_s26, %s1099_s26, %s1100_s27  }
  0x16   :  { %s1101_s30 = smov [#allocation3]   ;;  %s1102_s6 = smov [#allocation8]  }
  0x17   :  { %s20_s5 = sshll.u32 %s1101_s30, 4  ;;  %s41_s7 = sshll.u32 %s1102_s6, 4  ;;  %s21_s5 = int_to_ptr.vmem [resolvable:$true] %s20_s5  ;;  %s42_s7 = int_to_ptr.vmem [resolvable:$true] %s41_s7 }
  0x18   :  { %s1026_s10 = scalar_lea.hbm %s1390_s0, 128 }
  0x19   :  { %p1027_p8 = scmp.ne.s32.totalorder %s1390_s0, %s1026_s10  ;;  %p1030_p9 = scmp.lt.u32.totalorder %s1026_s10, %s1390_s0 }
  0x1b   :  { %p1032_p10 = pnand %p1030_p9, %p1027_p8 }
  0x1d   :  { %1035 = shalt.err (!%p1032_p10)
}
  0x1e   :  { %s1036_s1 = scalar_lea.vmem %s21_s5, 128  ;;  %p1041_p12 = scmp.lt.s32.totalorder %s21_s5, %s21_s5 }
  0x1f   :  { %p1037_p11 = scmp.ne.s32.totalorder %s21_s5, %s1036_s1  ;;  %p1042_p13 = scmp.lt.s32.totalorder %s1036_s1, %s1036_s1 }
  0x21   :  { %p1043_p0 = por %p1042_p13, %p1041_p12 }
  0x23   :  { %p1044_p1 = pnand %p1043_p0, %p1037_p11 }
  0x25   :  { %1047 = shalt.err (!%p1044_p1)
}
  0x26   :  { %23 = dma.hbm_to_vmem [thread:$0]  %s1390_s0, 128, %s21_s5, [#allocation4]  }
  0x27   :  { %s1048_s19 = scalar_lea.hbm %s1392_s2, 512 }
  0x28   :  { %p1049_p2 = scmp.ne.s32.totalorder %s1392_s2, %s1048_s19  ;;  %p1052_p3 = scmp.lt.u32.totalorder %s1048_s19, %s1392_s2 }
  0x2a   :  { %p1054_p4 = pnand %p1052_p3, %p1049_p2 }
  0x2c   :  { %1057 = shalt.err (!%p1054_p4)
}
  0x2d   :  { %s1058_s24 = scalar_lea.vmem %s42_s7, 512  ;;  %p1063_p6 = scmp.lt.s32.totalorder %s42_s7, %s42_s7 }
  0x2e   :  { %p1059_p5 = scmp.ne.s32.totalorder %s42_s7, %s1058_s24  ;;  %p1064_p7 = scmp.lt.s32.totalorder %s1058_s24, %s1058_s24 }
  0x30   :  { %p1065_p8 = por %p1064_p7, %p1063_p6 }
  0x32   :  { %p1066_p9 = pnand %p1065_p8, %p1059_p5 }
  0x34   :  { %1069 = shalt.err (!%p1066_p9)
}
  0x35   :  { %47 = dma.hbm_to_vmem [thread:$0]  %s1392_s2, 512, %s42_s7, [#allocation7], %s1099_s26, %s1099_s26, %s1100_s27  }
  0x36   :  { %1092 = dma.done.wait [#allocation4], 128  }
  0x37   :  { %1093 = vsyncadd [#allocation4], 4294967168 }
  0x38   :  { %1094 = dma.done.wait [#allocation7], 2560  }
  0x39   :  { %1095 = vsyncadd [#allocation7], 4294964736  ;;  %v76_v1 = vlaneseq  ;;  %v59_v3 = vld [vmem:[#allocation3] sm:$0xff]  ;;  %vm80_vm0 = vcmask 130048   ;;  %v175_v20 = vld [vmem:[#allocation8] sm:$0xff]  ;;  %vm179_vm5 = vcmask 261120  }
  0x3a   :  { %vm113_vm1 = vcmp.eq.s32.totalorder %v59_v3, 62  ;;  %vm130_vm2 = vcmp.eq.s32.totalorder %v59_v3, 63  ;;  %vm78_vm3 = vcmp.eq.s32.totalorder %v59_v3, 60  ;;  %vm96_vm4 = vcmp.eq.s32.totalorder %v59_v3, 61  ;;  %v176_v21 = vld [vmem:[#allocation8 + $0x8] sm:$0xff]  ;;  %v177_v22 = vld [vmem:[#allocation8 + $0x10] sm:$0xff] }
  0x3b   :  { %v1177_v2 = vand.u32 127, %v76_v1  ;;  %v980_v23 = vpack.c.bf16 %v176_v21, %v175_v20  ;;  %v178_v24 = vld [vmem:[#allocation8 + $0x18] sm:$0xff]  ;;  %v60_v25 = vld [vmem:[#allocation6] sm:$0xff]  ;;  %v61_v28 = vld [vmem:[#allocation6 + $0x8] sm:$0xff]  ;;  %s1104_s2 = smov 127   ;;  %s1105_s3 = smov [#allocation9]  }
  0x3c   :  { %v984_v26 = vpack.c.bf16 %v178_v24, %v177_v22  ;;  %956 = vmatprep.mubr.msk.f32.mxu0 %vm179_vm5, %v60_v25  ;;  %v68_v27 = vld [vmem:[#allocation6 + $0x40] sm:$0xff]  ;;  %v69_v29 = vld [vmem:[#allocation6 + $0x48] sm:$0xff]  ;;  %v62_v30 = vld [vmem:[#allocation6 + $0x10] sm:$0xff]  ;;  %s899_s26 = sshll.u32 %s1105_s3, 4  ;;  %s900_s26 = int_to_ptr.vmem [resolvable:$true] %s899_s26 }
  0x3d   :  { %v114_v4 = vsel %vm113_vm1, %v1177_v2, 16  ;;  %v131_v5 = vsel %vm130_vm2, %v1177_v2, 16  ;;  %v79_v6 = vsel %vm78_vm3, %v1177_v2, 16  ;;  %v97_v7 = vsel %vm96_vm4, %v1177_v2, 16  ;;  %981 = vmatprep.subr.bf16.mxu0 %v980_v23  ;;  %988 = vmatprep.subr.bf16.mxu1 %v980_v23  ;;  %v70_v31 = vld [vmem:[#allocation6 + $0x50] sm:$0xff]  ;;  %v63_v32 = vld [vmem:[#allocation6 + $0x18] sm:$0xff]  ;;  %p1075_p11 = scmp.lt.s32.totalorder %s900_s26, %s900_s26 }
  0x3e   :  { %v1184_v8 = vsel %vm80_vm0, %v114_v4, 2147483647  ;;  %v1187_v9 = vsel %vm80_vm0, %v131_v5, 2147483647  ;;  %v1190_v10 = vsel %vm80_vm0, %v79_v6, 2147483647  ;;  %983 = vmatpush3.bf16.msra.mxu0 %v980_v23  ;;  %990 = vmatpush3.bf16.msra.mxu1 %v980_v23 }
  0x3f   :  { %v117_v11 = vshra.s32 %v1184_v8, 16  ;;  %v134_v12 = vshra.s32 %v1187_v9, 16  ;;  %v83_v13 = vshra.s32 %v1190_v10, 16  ;;  %v1196_v14 = vsel %vm80_vm0, %v97_v7, 2147483647  ;;  %985 = vmatprep.subr.bf16.mxu0 %v984_v26  ;;  %989 = vmatprep.subr.bf16.mxu1 %v984_v26  ;;  %v71_v33 = vld [vmem:[#allocation6 + $0x58] sm:$0xff] }
  0x40   :  { %v100_v15 = vshra.s32 %v1196_v14, 16  ;;  %968 = vmatprep.mubr.msk.f32.mxu1 %vm179_vm5, %v68_v27  ;;  %v64_v34 = vld [vmem:[#allocation6 + $0x20] sm:$0xff]  ;;  %v65_v36 = vld [vmem:[#allocation6 + $0x28] sm:$0xff]  ;;  %v66_v38 = vld [vmem:[#allocation6 + $0x30] sm:$0xff]  ;;  %v116_v42 = vand.u32 65535, %v1184_v8  ;;  %v82_v43 = vand.u32 65535, %v1190_v10 }
  0x41   :  { %v1199_v16 = vcvt.s32.f32 %v117_v11  ;;  %v1201_v17 = vcvt.s32.f32 %v83_v13  ;;  %v1204_v18 = vcvt.s32.f32 %v134_v12  ;;  %v72_v35 = vld [vmem:[#allocation6 + $0x60] sm:$0xff]  ;;  %v73_v37 = vld [vmem:[#allocation6 + $0x68] sm:$0xff]  ;;  %v74_v39 = vld [vmem:[#allocation6 + $0x70] sm:$0xff]  ;;  %v133_v45 = vand.u32 65535, %v1187_v9  ;;  %s1070_s27 = scalar_lea.vmem %s900_s26, 16  ;;  %s1074_s28 = scalar_lea.vmem %s900_s26, 32 }
  0x42   :  { %v1207_v19 = vcvt.s32.f32 %v100_v15  ;;  %987 = vmatpush3.bf16.msra.mxu0 %v984_v26  ;;  %991 = vmatpush3.bf16.msra.mxu1 %v984_v26  ;;  %v67_v40 = vld [vmem:[#allocation6 + $0x38] sm:$0xff]  ;;  %v118_v44 = vcvt.s32.f32 %v116_v42  ;;  %v84_v48 = vcvt.s32.f32 %v82_v43  ;;  %v99_v49 = vand.u32 65535, %v1196_v14  ;;  %p1071_p10 = scmp.ne.s32.totalorder %s900_s26, %s1070_s27  ;;  %p1076_p12 = scmp.lt.s32.totalorder %s1074_s28, %s1070_s27 }
  0x43   :  { %120 = vmin.xlane.f32.xlu0 %v1199_v16  ;;  %86 = vmin.xlane.f32.xlu1 %v1201_v17  ;;  %v75_v41 = vld [vmem:[#allocation6 + $0x78] sm:$0xff]  ;;  %v135_v51 = vcvt.s32.f32 %v133_v45  ;;  %v1244_v11 = vshrl.u32 %v76_v1, 7  ;;  %v1103_v23 = vmov 0.0  }
  0x44   :  { %v101_v55 = vcvt.s32.f32 %v99_v49  ;;  %p1077_p13 = por %p1076_p12, %p1075_p11 }
  0x45   :  { %957 = vmatmul.mubr.msk.f32.vlgmr.msra.gmra.mrb[0].mxu0 %vm179_vm5, %v61_v28  ;;  %969 = vmatmul.mubr.msk.f32.vlgmr.msra.gmra.mrb[0].mxu1 %vm179_vm5, %v69_v29  ;;  %v397_v28 = vsub.s32 2, %v1244_v11  ;;  %v419_v43 = vsub.s32 4, %v1244_v11 }
  0x46   :  { %959 = vmatprep.mubr.msk.f32.mxu0 %vm179_vm5, %v62_v30  ;;  %971 = vmatprep.mubr.msk.f32.mxu1 %vm179_vm5, %v70_v31  ;;  %p1078_p0 = pnand %p1077_p13, %p1071_p10 }
  0x47   :  { %137 = vmin.xlane.f32.xlu0 %v1204_v18  ;;  %103 = vmin.xlane.f32.xlu1 %v1207_v19 }
  0x49   :  { %960 = vmatmul.mubr.msk.f32.gmra.mrb[2].mxu0 %vm179_vm5, %v63_v32  ;;  %972 = vmatmul.mubr.msk.f32.gmra.mrb[2].mxu1 %vm179_vm5, %v71_v33  ;;  %v441_v32 = vsub.s32 6, %v1244_v11 }
  0x4a   :  { %962 = vmatprep.mubr.msk.f32.mxu0 %vm179_vm5, %v64_v34  ;;  %974 = vmatprep.mubr.msk.f32.mxu1 %vm179_vm5, %v72_v35 }
  0x4d   :  { %963 = vmatmul.mubr.msk.f32.gmra.mrb[4].mxu0 %vm179_vm5, %v65_v36  ;;  %975 = vmatmul.mubr.msk.f32.gmra.mrb[4].mxu1 %vm179_vm5, %v73_v37  ;;  %v375_v36 = vsub.s32 0, %v1244_v11 }
  0x4e   :  { %965 = vmatprep.mubr.msk.f32.mxu0 %vm179_vm5, %v66_v38  ;;  %977 = vmatprep.mubr.msk.f32.mxu1 %vm179_vm5, %v74_v39 }
  0x51   :  { %966 = vmatmul.mubr.msk.f32.gmra.mrb[6].mxu0 %vm179_vm5, %v67_v40  ;;  %978 = vmatmul.mubr.msk.f32.gmra.mrb[6].mxu1 %vm179_vm5, %v75_v41  ;;  %v408_v40 = vsub.s32 3, %v1244_v11 }
  0xd0   :  { %v121_v46 = vpop.xlane.xlu0 %120  ;;  %v87_v47 = vpop.xlane.xlu1 %86 }
  0xd1   :  { %vm122_vm6 = vcmp.eq.f32.partialorder %v1199_v16, %v121_v46  ;;  %vm88_vm7 = vcmp.eq.f32.partialorder %v1201_v17, %v87_v47  ;;  %v127_v62 = vcvt.f32.s32 %v121_v46  ;;  %v93_v5 = vcvt.f32.s32 %v87_v47 }
  0xd2   :  { %v123_v50 = vsel %vm122_vm6, %v118_v44, inf  ;;  %v89_v53 = vsel %vm88_vm7, %v84_v48, inf  ;;  %v430_v47 = vsub.s32 5, %v1244_v11  ;;  %vm838_vm7 = vcmask 1041409  }
  0xd3   :  { %124 = vmin.xlane.f32.xlu0 %v123_v50  ;;  %v128_v4 = vshll.u32 %v127_v62, 16  ;;  %v94_v17 = vshll.u32 %v93_v5, 16 }
  0xd4   :  { %v138_v52 = vpop.xlane.xlu0 %137  ;;  %v104_v54 = vpop.xlane.xlu1 %103 }
  0xd5   :  { %vm139_vm8 = vcmp.eq.f32.partialorder %v1204_v18, %v138_v52  ;;  %vm105_vm9 = vcmp.eq.f32.partialorder %v1207_v19, %v104_v54  ;;  %v144_v0 = vcvt.f32.s32 %v138_v52  ;;  %v110_v13 = vcvt.f32.s32 %v104_v54 }
  0xd6   :  { %v140_v56 = vsel %vm139_vm8, %v135_v51, inf  ;;  %v106_v57 = vsel %vm105_vm9, %v101_v55, inf  ;;  %v386_v19 = vsub.s32 1, %v1244_v11  ;;  %v452_v52 = vsub.s32 7, %v1244_v11 }
  0xd7   :  { %141 = vmin.xlane.f32.xlu1 %v140_v56  ;;  %90 = vmin.xlane.f32.xlu0 %v89_v53  ;;  %v145_v8 = vshll.u32 %v144_v0, 16  ;;  %v111_v20 = vshll.u32 %v110_v13, 16  ;;  %vm841_vm8 = vcmask 1042434   ;;  %vm844_vm9 = vcmask 1043459  }
  0xdb   :  { %107 = vmin.xlane.f32.xlu1 %v106_v57 }
 0x118   :  { %v1235_v58 = vpop.f32.mrb[0].mxu0  ;;  %v1271_v37 = vpop.f32.mrb[0].mxu1 }
 0x119   :  { %v1237_v59 = vpop.f32.mrb[1].mxu0 }
 0x11c   :  { %v1239_v60 = vpop.f32.mrb[2].mxu0 }
 0x11d   :  { %v1241_v61 = vpop.f32.mrb[3].mxu0 }
 0x120   :  { %v1246_v12 = vpop.f32.mrb[4].mxu0 }
 0x121   :  { %v1248_v15 = vpop.f32.mrb[5].mxu0 }
 0x124   :  { %v1266_v33 = vpop.f32.mrb[6].mxu0 }
 0x125   :  { %v1268_v35 = vpop.f32.mrb[7].mxu0 }
 0x160   :  { %v125_v63 = vpop.xlane.xlu0 %124 }
 0x161   :  { %v126_v3 = vcvt.f32.s32 %v125_v63 }
 0x163   :  { %v129_v9 = vadd.s32 %v128_v4, %v126_v3 }
 0x164   :  { %v142_v6 = vpop.xlane.xlu1 %141  ;;  %v91_v7 = vpop.xlane.xlu0 %90 }
 0x165   :  { %v143_v10 = vcvt.f32.s32 %v142_v6  ;;  %v92_v14 = vcvt.f32.s32 %v91_v7  ;;  %vm150_vm10 = vcmp.lt.s32.totalorder %v129_v9, 16  ;;  %vm158_vm13 = vcmp.gt.s32.totalorder %v1177_v2, %v129_v9 }
 0x167   :  { %v146_v16 = vadd.s32 %v145_v8, %v143_v10  ;;  %v95_v21 = vadd.s32 %v94_v17, %v92_v14 }
 0x168   :  { %v108_v18 = vpop.xlane.xlu1 %107 }
 0x169   :  { %vm151_vm11 = vcmp.lt.s32.totalorder %v146_v16, 16  ;;  %vm159_vm12 = vcmp.lt.s32.totalorder %v1177_v2, %v146_v16  ;;  %v109_v22 = vcvt.f32.s32 %v108_v18  ;;  %vm147_vm1 = vcmp.lt.s32.totalorder %v95_v21, 16 }
 0x16a   :  { %vm1253_vm14 = vmand %vm150_vm10, %vm151_vm11  ;;  %vm153_vm4 = vcmp.gt.s32.totalorder %v1177_v2, %v95_v21  ;;  %vm847_vm10 = vcmask 1044484   ;;  %vm850_vm11 = vcmask 1045509  }
 0x16b   :  { %vm160_vm15 = vmand %vm158_vm13, %vm159_vm12  ;;  %v112_v25 = vadd.s32 %v111_v20, %v109_v22  ;;  %vm853_vm12 = vcmask 1046534   ;;  %vm856_vm13 = vcmask 1047559  }
 0x16c   :  { %v910_v24 = vsel %vm160_vm15, 1.0, %v1103_v23 }
 0x16d   :  { %v166_v26 = vsel %vm80_vm0, %v910_v24, 0.0  ;;  %v564_v27 = vrot.slane %v910_v24, %v386_v19  ;;  %vm148_vm2 = vcmp.lt.s32.totalorder %v112_v25, 16  ;;  %vm154_vm3 = vcmp.lt.s32.totalorder %v1177_v2, %v112_v25  ;;  %v1273_v2 = vpop.f32.mrb[1].mxu1 }
 0x16e   :  { %167 = vadd.xlane.f32.xlu0 %v166_v26  ;;  %vm1261_vm5 = vmand %vm147_vm1, %vm148_vm2  ;;  %v575_v31 = vrot.slane %v910_v24, %v397_v28  ;;  %v1275_v38 = vpop.f32.mrb[2].mxu1  ;;  %v553_v39 = vrot.slane %v910_v24, %v375_v36  ;;  %v586_v42 = vrot.slane %v910_v24, %v408_v40  ;;  %v597_v46 = vrot.slane %v910_v24, %v419_v43 }
 0x16f   :  { %566 = vbcast.lane.b32.xlu1 %v564_v27, 256  ;;  %vm155_vm6 = vmand %vm153_vm4, %vm154_vm3  ;;  %v1278_v41 = vpop.f32.mrb[3].mxu1  ;;  %v608_v50 = vrot.slane %v910_v24, %v430_v47  ;;  %v619_v51 = vrot.slane %v910_v24, %v441_v32  ;;  %v630_v53 = vrot.slane %v910_v24, %v452_v52 }
 0x170   :  { %v909_v30 = vsel %vm155_vm6, 1.0, %v1103_v23  ;;  %v1281_v44 = vpop.f32.mrb[4].mxu1 }
 0x171   :  { %v442_v34 = vrot.slane %v909_v30, %v441_v32  ;;  %v1283_v45 = vpop.f32.mrb[5].mxu1  ;;  %v387_v54 = vrot.slane %v909_v30, %v386_v19  ;;  %v398_v55 = vrot.slane %v909_v30, %v397_v28  ;;  %v376_v56 = vrot.slane %v909_v30, %v375_v36 }
 0x172   :  { %v1286_v48 = vpop.f32.mrb[6].mxu1  ;;  %v163_v57 = vsel %vm80_vm0, %v909_v30, 0.0  ;;  %v409_v62 = vrot.slane %v909_v30, %v408_v40  ;;  %v420_v63 = vrot.slane %v909_v30, %v419_v43  ;;  %v431_v0 = vrot.slane %v909_v30, %v430_v47 }
 0x173   :  { %577 = vbcast.lane.b32.xlu1 %v575_v31, 256  ;;  %v1288_v49 = vpop.f32.mrb[7].mxu1  ;;  %v453_v3 = vrot.slane %v909_v30, %v452_v52  ;;  %vm477_vm0 = vcmask 15360  }
 0x177   :  { %581 = vbcast.lane.b32.xlu1 %v575_v31, 264 }
 0x17b   :  { %555 = vbcast.lane.b32.xlu1 %v553_v39, 256 }
 0x17f   :  { %588 = vbcast.lane.b32.xlu1 %v586_v42, 256 }
 0x183   :  { %599 = vbcast.lane.b32.xlu1 %v597_v46, 256 }
 0x184   :  { %570 = vbcast.lane.b32.xlu0 %v564_v27, 264 }
 0x187   :  { %610 = vbcast.lane.b32.xlu1 %v608_v50, 256 }
 0x188   :  { %559 = vbcast.lane.b32.xlu0 %v553_v39, 264 }
 0x18b   :  { %621 = vbcast.lane.b32.xlu1 %v619_v51, 256 }
 0x18c   :  { %592 = vbcast.lane.b32.xlu0 %v586_v42, 264 }
 0x18f   :  { %632 = vbcast.lane.b32.xlu1 %v630_v53, 256 }
 0x190   :  { %603 = vbcast.lane.b32.xlu0 %v597_v46, 264 }
 0x194   :  { %614 = vbcast.lane.b32.xlu0 %v608_v50, 264 }
 0x198   :  { %625 = vbcast.lane.b32.xlu0 %v619_v51, 264 }
 0x19c   :  { %636 = vbcast.lane.b32.xlu0 %v630_v53, 264 }
 0x1a0   :  { %389 = vbcast.lane.b32.xlu0 %v387_v54, 256 }
 0x1a4   :  { %393 = vbcast.lane.b32.xlu0 %v387_v54, 264 }
 0x1a8   :  { %400 = vbcast.lane.b32.xlu0 %v398_v55, 256 }
 0x1ac   :  { %404 = vbcast.lane.b32.xlu0 %v398_v55, 264 }
 0x1b0   :  { %378 = vbcast.lane.b32.xlu0 %v376_v56, 256 }
 0x1b3   :  { %164 = vadd.xlane.f32.xlu1 %v163_v57 }
 0x1b4   :  { %382 = vbcast.lane.b32.xlu0 %v376_v56, 264 }
 0x1b8   :  { %411 = vbcast.lane.b32.xlu0 %v409_v62, 256 }
 0x1bc   :  { %415 = vbcast.lane.b32.xlu0 %v409_v62, 264 }
 0x1c0   :  { %422 = vbcast.lane.b32.xlu0 %v420_v63, 256 }
 0x1c4   :  { %433 = vbcast.lane.b32.xlu0 %v431_v0, 256  ;;  %426 = vbcast.lane.b32.xlu1 %v420_v63, 264 }
 0x1c8   :  { %437 = vbcast.lane.b32.xlu0 %v431_v0, 264  ;;  %459 = vbcast.lane.b32.xlu1 %v453_v3, 264 }
 0x1cc   :  { %444 = vbcast.lane.b32.xlu0 %v442_v34, 256 }
 0x1d0   :  { %448 = vbcast.lane.b32.xlu0 %v442_v34, 264 }
 0x1d4   :  { %455 = vbcast.lane.b32.xlu0 %v453_v3, 256 }
 0x1e1   :  { %v567_v4 = vpop.permute.xlu1 %566 }
 0x1e2   :  { %v640_v20 = vmul.f32 %v567_v4, %v1241_v61 }
 0x1e4   :  { %v663_v25 = vsel %vm477_vm0, %v640_v20, 0.0 }
 0x1e5   :  { %v578_v5 = vpop.permute.xlu1 %577 }
 0x1e6   :  { %v642_v6 = vmul.f32 %v578_v5, %v1248_v15 }
 0x1e8   :  { %v672_v9 = vsel %vm477_vm0, %v642_v6, 0.0 }
 0x1e9   :  { %v582_v7 = vpop.permute.xlu1 %581 }
 0x1ea   :  { %v643_v8 = vmul.f32 %v1246_v12, %v582_v7 }
 0x1ec   :  { %v673_v10 = vsel %vm477_vm0, %v643_v8, 0.0 }
 0x1ed   :  { %v674_v11 = vadd.f32 %v673_v10, %v672_v9  ;;  %v556_v14 = vpop.permute.xlu1 %555 }
 0x1ee   :  { %v638_v26 = vmul.f32 %v556_v14, %v1237_v59 }
 0x1ef   :  { %v675_v13 = vrot.slane %v674_v11, 4 }
 0x1f0   :  { %v654_v39 = vsel %vm477_vm0, %v638_v26, 0.0 }
 0x1f1   :  { %v676_v16 = vadd.f32 %v675_v13, %v674_v11  ;;  %v589_v17 = vpop.permute.xlu1 %588 }
 0x1f2   :  { %v644_v40 = vmul.f32 %v589_v17, %v1268_v35 }
 0x1f3   :  { %v677_v19 = vrot.slane %v676_v16, 2 }
 0x1f4   :  { %v681_v57 = vsel %vm477_vm0, %v644_v40, 0.0 }
 0x1f5   :  { %v678_v22 = vadd.f32 %v677_v19, %v676_v16  ;;  %v600_v24 = vpop.permute.xlu1 %599 }
 0x1f6   :  { %v646_v62 = vmul.f32 %v600_v24, %v1273_v2 }
 0x1f7   :  { %v679_v32 = vrot.slane %v678_v22, 1 }
 0x1f8   :  { %v690_v11 = vsel %vm477_vm0, %v646_v62, 0.0 }
 0x1f9   :  { %v611_v43 = vpop.permute.xlu1 %610  ;;  %v680_v53 = vadd.f32 %v679_v32, %v678_v22 }
 0x1fa   :  { %v648_v13 = vmul.f32 %v611_v43, %v1278_v41 }
 0x1fb   :  { %v168_v18 = vpop.xlane.xlu0 %167 }
 0x1fc   :  { %1000 = vrcp.f32 %v168_v18 }
 0x1fd   :  { %v622_v7 = vpop.permute.xlu1 %621 }
 0x1ff   :  { %v571_v21 = vpop.permute.xlu0 %570 }
 0x200   :  { %v641_v23 = vmul.f32 %v1239_v60, %v571_v21 }
 0x202   :  { %v664_v27 = vsel %vm477_vm0, %v641_v23, 0.0 }
 0x203   :  { %v665_v28 = vadd.f32 %v664_v27, %v663_v25  ;;  %v560_v30 = vpop.permute.xlu0 %559  ;;  %v699_v27 = vsel %vm477_vm0, %v648_v13, 0.0 }
 0x204   :  { %v639_v31 = vmul.f32 %v1235_v58, %v560_v30 }
 0x205   :  { %v666_v34 = vrot.slane %v665_v28, 4 }
 0x206   :  { %v1001_v36 = vpop.eup %1000  ;;  %v655_v42 = vsel %vm477_vm0, %v639_v31, 0.0  ;;  %v633_v31 = vpop.permute.xlu1 %632 }
 0x207   :  { %v1307_v46 = vsel %vm1253_vm14, %v1001_v36, 0.0  ;;  %v667_v47 = vadd.f32 %v666_v34, %v665_v28  ;;  %v656_v50 = vadd.f32 %v655_v42, %v654_v39  ;;  %v593_v51 = vpop.permute.xlu0 %592  ;;  %v650_v28 = vmul.f32 %v622_v7, %v1283_v45 }
 0x208   :  { %v645_v52 = vmul.f32 %v1266_v33, %v593_v51  ;;  %v752_v54 = vrot.slane %v1307_v46, 2  ;;  %v751_v16 = vrot.slane %v1307_v46, 1  ;;  %vm891_vm14 = vcmask 57344  }
 0x209   :  { %v668_v55 = vrot.slane %v667_v47, 2  ;;  %v657_v56 = vrot.slane %v656_v50, 4 }
 0x20a   :  { %v682_v63 = vsel %vm477_vm0, %v645_v52, 0.0  ;;  %v768_v0 = vmul.f32 %v752_v54, %v680_v53  ;;  %v708_v52 = vsel %vm477_vm0, %v650_v28, 0.0  ;;  %v652_v53 = vmul.f32 %v633_v31, %v1288_v49 }
 0x20b   :  { %v669_v1 = vadd.f32 %v668_v55, %v667_v47  ;;  %v658_v3 = vadd.f32 %v657_v56, %v656_v50  ;;  %v683_v4 = vadd.f32 %v682_v63, %v681_v57  ;;  %v604_v5 = vpop.permute.xlu0 %603  ;;  %v753_v55 = vrot.slane %v1307_v46, 3 }
 0x20c   :  { %v647_v6 = vmul.f32 %v1271_v37, %v604_v5  ;;  %786 = vrot.lane.b32.xlu1 %v768_v0, %s1104_s2  ;;  %v717_v7 = vsel %vm477_vm0, %v652_v53, 0.0 }
 0x20d   :  { %v659_v8 = vrot.slane %v658_v3, 2  ;;  %v684_v9 = vrot.slane %v683_v4, 4  ;;  %v670_v10 = vrot.slane %v669_v1, 1 }
 0x20e   :  { %v691_v14 = vsel %vm477_vm0, %v647_v6, 0.0 }
 0x20f   :  { %v660_v17 = vadd.f32 %v659_v8, %v658_v3  ;;  %v685_v18 = vadd.f32 %v684_v9, %v683_v4  ;;  %v692_v19 = vadd.f32 %v691_v14, %v690_v11  ;;  %v615_v20 = vpop.permute.xlu0 %614  ;;  %v671_v21 = vadd.f32 %v670_v10, %v669_v1 }
 0x210   :  { %v649_v22 = vmul.f32 %v1275_v38, %v615_v20 }
 0x211   :  { %v686_v23 = vrot.slane %v685_v18, 2  ;;  %v693_v24 = vrot.slane %v692_v19, 4  ;;  %v661_v25 = vrot.slane %v660_v17, 1  ;;  %v767_v26 = vmul.f32 %v751_v16, %v671_v21 }
 0x212   :  { %v700_v30 = vsel %vm477_vm0, %v649_v22, 0.0  ;;  %v754_v16 = vrot.slane %v1307_v46, 4 }
 0x213   :  { %v687_v32 = vadd.f32 %v686_v23, %v685_v18  ;;  %v694_v34 = vadd.f32 %v693_v24, %v692_v19  ;;  %v701_v36 = vadd.f32 %v700_v30, %v699_v27  ;;  %v626_v39 = vpop.permute.xlu0 %625  ;;  %v662_v40 = vadd.f32 %v661_v25, %v660_v17 }
 0x214   :  { %v651_v42 = vmul.f32 %v1281_v44, %v626_v39  ;;  %v755_v27 = vrot.slane %v1307_v46, 5 }
 0x215   :  { %v695_v43 = vrot.slane %v694_v34, 2  ;;  %v702_v47 = vrot.slane %v701_v36, 4  ;;  %v766_v50 = vmul.f32 %v662_v40, %v1307_v46  ;;  %v688_v51 = vrot.slane %v687_v32, 1 }
 0x216   :  { %v709_v54 = vsel %vm477_vm0, %v651_v42, 0.0  ;;  %v756_v42 = vrot.slane %v1307_v46, 6 }
 0x217   :  { %v696_v56 = vadd.f32 %v695_v43, %v694_v34  ;;  %v703_v57 = vadd.f32 %v702_v47, %v701_v36  ;;  %v710_v62 = vadd.f32 %v709_v54, %v708_v52  ;;  %782 = vrot.lane.b32.xlu0 %v766_v50, %s1104_s2  ;;  %v637_v63 = vpop.permute.xlu0 %636  ;;  %v689_v0 = vadd.f32 %v688_v51, %v687_v32 }
 0x218   :  { %v653_v1 = vmul.f32 %v1286_v48, %v637_v63  ;;  %v757_v52 = vrot.slane %v1307_v46, 7 }
 0x219   :  { %v704_v3 = vrot.slane %v703_v57, 2  ;;  %v711_v4 = vrot.slane %v710_v62, 4  ;;  %v769_v5 = vmul.f32 %v753_v55, %v689_v0  ;;  %v697_v6 = vrot.slane %v696_v56, 1 }
 0x21a   :  { %v718_v8 = vsel %vm477_vm0, %v653_v1, 0.0 }
 0x21b   :  { %v705_v9 = vadd.f32 %v704_v3, %v703_v57  ;;  %v712_v10 = vadd.f32 %v711_v4, %v710_v62  ;;  %v719_v11 = vadd.f32 %v718_v8, %v717_v7  ;;  %784 = vrot.lane.b32.xlu0 %v767_v26, %s1104_s2  ;;  %788 = vrot.lane.b32.xlu1 %v769_v5, %s1104_s2  ;;  %v390_v13 = vpop.permute.xlu0 %389 }
 0x21c   :  { %v698_v14 = vadd.f32 %v697_v6, %v696_v56  ;;  %v463_v20 = vmul.f32 %v390_v13, %v1241_v61 }
 0x21d   :  { %v713_v17 = vrot.slane %v712_v10, 2  ;;  %v720_v18 = vrot.slane %v719_v11, 4  ;;  %v706_v19 = vrot.slane %v705_v9, 1 }
 0x21e   :  { %v770_v21 = vmul.f32 %v754_v16, %v698_v14  ;;  %v487_v32 = vsel %vm477_vm0, %v463_v20, 0.0 }
 0x21f   :  { %v714_v22 = vadd.f32 %v713_v17, %v712_v10  ;;  %v721_v23 = vadd.f32 %v720_v18, %v719_v11  ;;  %v394_v24 = vpop.permute.xlu0 %393  ;;  %v707_v25 = vadd.f32 %v706_v19, %v705_v9 }
 0x220   :  { %790 = vrot.lane.b32.xlu0 %v770_v21, %s1104_s2  ;;  %v464_v26 = vmul.f32 %v1239_v60, %v394_v24 }
 0x221   :  { %v722_v28 = vrot.slane %v721_v23, 2  ;;  %v771_v30 = vmul.f32 %v755_v27, %v707_v25  ;;  %v715_v31 = vrot.slane %v714_v22, 1 }
 0x222   :  { %v488_v34 = vsel %vm477_vm0, %v464_v26, 0.0 }
 0x223   :  { %v723_v36 = vadd.f32 %v722_v28, %v721_v23  ;;  %v489_v61 = vadd.f32 %v488_v34, %v487_v32  ;;  %792 = vrot.lane.b32.xlu1 %v771_v30, %s1104_s2  ;;  %v401_v39 = vpop.permute.xlu0 %400  ;;  %v716_v40 = vadd.f32 %v715_v31, %v714_v22 }
 0x224   :  { %v465_v50 = vmul.f32 %v401_v39, %v1248_v15 }
 0x225   :  { %v772_v43 = vmul.f32 %v756_v42, %v716_v40  ;;  %v724_v47 = vrot.slane %v723_v36, 1  ;;  %v490_v4 = vrot.slane %v489_v61, 4 }
 0x226   :  { %v496_v55 = vsel %vm477_vm0, %v465_v50, 0.0 }
 0x227   :  { %794 = vrot.lane.b32.xlu0 %v772_v43, %s1104_s2  ;;  %v405_v60 = vpop.permute.xlu0 %404  ;;  %v725_v51 = vadd.f32 %v724_v47, %v723_v36  ;;  %v491_v10 = vadd.f32 %v490_v4, %v489_v61 }
 0x228   :  { %v466_v53 = vmul.f32 %v1246_v12, %v405_v60 }
 0x229   :  { %v773_v54 = vmul.f32 %v757_v52, %v725_v51  ;;  %v492_v17 = vrot.slane %v491_v10, 2 }
 0x22a   :  { %v497_v56 = vsel %vm477_vm0, %v466_v53, 0.0 }
 0x22b   :  { %v498_v57 = vadd.f32 %v497_v56, %v496_v55  ;;  %796 = vrot.lane.b32.xlu1 %v773_v54, %s1104_s2  ;;  %v379_v62 = vpop.permute.xlu0 %378  ;;  %v493_v24 = vadd.f32 %v492_v17, %v491_v10 }
 0x22c   :  { %v461_v63 = vmul.f32 %v379_v62, %v1237_v59 }
 0x22d   :  { %v499_v5 = vrot.slane %v498_v57, 4  ;;  %v494_v36 = vrot.slane %v493_v24, 1 }
 0x22e   :  { %v478_v1 = vsel %vm477_vm0, %v461_v63, 0.0 }
 0x22f   :  { %v383_v15 = vpop.permute.xlu0 %382  ;;  %v500_v11 = vadd.f32 %v499_v5, %v498_v57  ;;  %v495_v53 = vadd.f32 %v494_v36, %v493_v24 }
 0x230   :  { %v462_v0 = vmul.f32 %v1235_v58, %v383_v15 }
 0x231   :  { %v501_v19 = vrot.slane %v500_v11, 2 }
 0x232   :  { %v479_v46 = vsel %vm477_vm0, %v462_v0, 0.0 }
 0x233   :  { %v480_v3 = vadd.f32 %v479_v46, %v478_v1  ;;  %v412_v12 = vpop.permute.xlu0 %411  ;;  %v502_v25 = vadd.f32 %v501_v19, %v500_v11 }
 0x234   :  { %v467_v7 = vmul.f32 %v412_v12, %v1268_v35 }
 0x235   :  { %v481_v6 = vrot.slane %v480_v3, 4  ;;  %v503_v40 = vrot.slane %v502_v25, 1 }
 0x236   :  { %v505_v13 = vsel %vm477_vm0, %v467_v7, 0.0 }
 0x237   :  { %v416_v8 = vpop.permute.xlu0 %415  ;;  %v482_v59 = vadd.f32 %v481_v6, %v480_v3  ;;  %v504_v57 = vadd.f32 %v503_v40, %v502_v25 }
 0x238   :  { %v468_v9 = vmul.f32 %v1266_v33, %v416_v8 }
 0x239   :  { %v483_v20 = vrot.slane %v482_v59, 2 }
 0x23a   :  { %v506_v58 = vsel %vm477_vm0, %v468_v9, 0.0 }
 0x23b   :  { %v507_v14 = vadd.f32 %v506_v58, %v505_v13  ;;  %v423_v16 = vpop.permute.xlu0 %422  ;;  %v484_v27 = vadd.f32 %v483_v20, %v482_v59 }
 0x23c   :  { %v469_v26 = vmul.f32 %v423_v16, %v1273_v2 }
 0x23d   :  { %v508_v18 = vrot.slane %v507_v14, 4  ;;  %v485_v42 = vrot.slane %v484_v27, 1 }
 0x23f   :  { %v509_v21 = vadd.f32 %v508_v18, %v507_v14  ;;  %v434_v22 = vpop.permute.xlu0 %433  ;;  %v486_v62 = vadd.f32 %v485_v42, %v484_v27 }
 0x240   :  { %v165_v23 = vpop.xlane.xlu1 %164  ;;  %v471_v33 = vmul.f32 %v434_v22, %v1278_v41  ;;  %v514_v41 = vsel %vm477_vm0, %v469_v26, 0.0 }
 0x241   :  { %v510_v35 = vrot.slane %v509_v21, 2  ;;  %1002 = vrcp.f32 %v165_v23 }
 0x242   :  { %v523_v61 = vsel %vm477_vm0, %v471_v33, 0.0 }
 0x243   :  { %v438_v28 = vpop.permute.xlu0 %437  ;;  %v511_v30 = vadd.f32 %v510_v35, %v509_v21 }
 0x244   :  { %v472_v31 = vmul.f32 %v1275_v38, %v438_v28  ;;  %v427_v32 = vpop.permute.xlu1 %426 }
 0x245   :  { %v470_v34 = vmul.f32 %v1271_v37, %v427_v32  ;;  %v512_v50 = vrot.slane %v511_v30, 1 }
 0x246   :  { %v524_v39 = vsel %vm477_vm0, %v472_v31, 0.0 }
 0x247   :  { %v525_v43 = vadd.f32 %v524_v39, %v523_v61  ;;  %v515_v47 = vsel %vm477_vm0, %v470_v34, 0.0  ;;  %v445_v2 = vpop.permute.xlu0 %444  ;;  %v513_v63 = vadd.f32 %v512_v50, %v511_v30 }
 0x248   :  { %v516_v60 = vadd.f32 %v515_v47, %v514_v41  ;;  %v460_v38 = vpop.permute.xlu1 %459  ;;  %v473_v37 = vmul.f32 %v445_v2, %v1283_v45  ;;  %v927_v2 = vld [vmem:[#allocation2] ss:$0 sm:$0xff] }
 0x249   :  { %v526_v51 = vrot.slane %v525_v43, 4  ;;  %v476_v1 = vmul.f32 %v1286_v48, %v460_v38 }
 0x24a   :  { %v517_v52 = vrot.slane %v516_v60, 4  ;;  %v532_v6 = vsel %vm477_vm0, %v473_v37, 0.0 }
 0x24b   :  { %v1003_v54 = vpop.eup %1002  ;;  %v527_v55 = vadd.f32 %v526_v51, %v525_v43  ;;  %v449_v56 = vpop.permute.xlu0 %448  ;;  %v542_v14 = vsel %vm477_vm0, %v476_v1, 0.0 }
 0x24c   :  { %v171_v15 = vsel %vm1261_vm5, %v1003_v54, 0.0  ;;  %v518_v0 = vadd.f32 %v517_v52, %v516_v60  ;;  %v474_v46 = vmul.f32 %v1281_v44, %v449_v56 }
 0x24d   :  { %v528_v3 = vrot.slane %v527_v55, 2  ;;  %v728_v12 = vrot.slane %v171_v15, 2  ;;  %v742_v4 = vmul.f32 %v486_v62, %v171_v15  ;;  %v729_v5 = vrot.slane %v171_v15, 3 }
 0x24e   :  { %v519_v45 = vrot.slane %v518_v0, 2  ;;  %v533_v7 = vsel %vm477_vm0, %v474_v46, 0.0  ;;  %v727_v8 = vrot.slane %v171_v15, 1  ;;  %v730_v22 = vrot.slane %v171_v15, 4 }
 0x24f   :  { %v534_v9 = vadd.f32 %v533_v7, %v532_v6  ;;  %v456_v10 = vpop.permute.xlu0 %455  ;;  %v744_v11 = vmul.f32 %v728_v12, %v504_v57  ;;  %v745_v29 = vmul.f32 %v729_v5, %v513_v63  ;;  %v529_v58 = vadd.f32 %v528_v3, %v527_v55 }
 0x250   :  { %v475_v59 = vmul.f32 %v456_v10, %v1288_v49  ;;  %v743_v13 = vmul.f32 %v727_v8, %v495_v53  ;;  %v520_v48 = vadd.f32 %v519_v45, %v518_v0  ;;  %v731_v23 = vrot.slane %v171_v15, 5 }
 0x251   :  { %v535_v44 = vrot.slane %v534_v9, 4  ;;  %v530_v18 = vrot.slane %v529_v58, 1  ;;  %v732_v32 = vrot.slane %v171_v15, 6  ;;  %v733_v39 = vrot.slane %v171_v15, 7 }
 0x252   :  { %v541_v16 = vsel %vm477_vm0, %v475_v59, 0.0  ;;  %v521_v17 = vrot.slane %v520_v48, 1 }
 0x253   :  { %v536_v19 = vadd.f32 %v535_v44, %v534_v9  ;;  %v543_v20 = vadd.f32 %v542_v14, %v541_v16  ;;  %v531_v35 = vadd.f32 %v530_v18, %v529_v58 }
 0x254   :  { %v522_v21 = vadd.f32 %v521_v17, %v520_v48 }
 0x255   :  { %v537_v24 = vrot.slane %v536_v19, 2  ;;  %v544_v33 = vrot.slane %v543_v20, 4  ;;  %v747_v49 = vmul.f32 %v731_v23, %v531_v35 }
 0x256   :  { %v746_v25 = vmul.f32 %v730_v22, %v522_v21 }
 0x257   :  { %v545_v27 = vadd.f32 %v544_v33, %v543_v20  ;;  %v538_v26 = vadd.f32 %v537_v24, %v536_v19 }
 0x259   :  { %v546_v28 = vrot.slane %v545_v27, 2  ;;  %v539_v30 = vrot.slane %v538_v26, 1 }
 0x25b   :  { %v540_v31 = vadd.f32 %v539_v30, %v538_v26  ;;  %v547_v34 = vadd.f32 %v546_v28, %v545_v27 }
 0x25d   :  { %v748_v36 = vmul.f32 %v732_v32, %v540_v31  ;;  %v548_v61 = vrot.slane %v547_v34, 1 }
 0x25f   :  { %v549_v40 = vadd.f32 %v548_v61, %v547_v34 }
 0x261   :  { %v749_v42 = vmul.f32 %v733_v39, %v549_v40 }
 0x27e   :  { %v787_v41 = vpop.permute.xlu1 %786 }
 0x27f   :  { %v808_v47 = vadd.f32 %v787_v41, %v744_v11 }
 0x281   :  { %v823_v37 = vadd.f32 %v927_v2, %v808_v47 }
 0x283   :  { %v840_v62 = vrot.slane %v823_v37, 6 }
 0x289   :  { %v783_v43 = vpop.permute.xlu0 %782 }
 0x28a   :  { %v806_v51 = vadd.f32 %v783_v43, %v742_v4 }
 0x28c   :  { %v821_v55 = vadd.f32 %v927_v2, %v806_v51 }
 0x28d   :  { %v789_v50 = vpop.permute.xlu1 %788  ;;  %v785_v60 = vpop.permute.xlu0 %784 }
 0x28e   :  { %v809_v38 = vadd.f32 %v789_v50, %v745_v29  ;;  %v807_v52 = vadd.f32 %v785_v60, %v743_v13 }
 0x290   :  { %v824_v53 = vadd.f32 %v927_v2, %v809_v38  ;;  %v822_v54 = vadd.f32 %v927_v2, %v807_v52 }
 0x292   :  { %v837_v56 = vrot.slane %v822_v54, 7  ;;  %v791_v57 = vpop.permute.xlu0 %790  ;;  %v843_v15 = vrot.slane %v824_v53, 5 }
 0x293   :  { %v810_v63 = vadd.f32 %v791_v57, %v746_v25 }
 0x294   :  { %v839_v0 = vsel %vm838_vm7, %v837_v56, %v821_v55 }
 0x295   :  { %v842_v1 = vsel %vm841_vm8, %v840_v62, %v839_v0  ;;  %v825_v46 = vadd.f32 %v927_v2, %v810_v63  ;;  %v793_v3 = vpop.permute.xlu1 %792 }
 0x296   :  { %v811_v12 = vadd.f32 %v793_v3, %v747_v49  ;;  %v845_v4 = vsel %vm844_vm9, %v843_v15, %v842_v1 }
 0x297   :  { %v846_v5 = vrot.slane %v825_v46, 4 }
 0x298   :  { %v826_v45 = vadd.f32 %v927_v2, %v811_v12 }
 0x299   :  { %v795_v6 = vpop.permute.xlu0 %794  ;;  %v848_v7 = vsel %vm847_vm10, %v846_v5, %v845_v4 }
 0x29a   :  { %v849_v8 = vrot.slane %v826_v45, 3  ;;  %v812_v9 = vadd.f32 %v795_v6, %v748_v36 }
 0x29c   :  { %v827_v10 = vadd.f32 %v927_v2, %v812_v9  ;;  %v851_v11 = vsel %vm850_vm11, %v849_v8, %v848_v7 }
 0x29d   :  { %v797_v29 = vpop.permute.xlu1 %796 }
 0x29e   :  { %v852_v59 = vrot.slane %v827_v10, 2  ;;  %v813_v13 = vadd.f32 %v797_v29, %v749_v42 }
 0x2a0   :  { %v828_v48 = vadd.f32 %v927_v2, %v813_v13  ;;  %v854_v58 = vsel %vm853_vm12, %v852_v59, %v851_v11 }
 0x2a2   :  { %v855_v44 = vrot.slane %v828_v48, 1 }
 0x2a4   :  { %v857_v14 = vsel %vm856_vm13, %v855_v44, %v854_v58 }
 0x2a5   :  { %859 = vxpose.xlu0.b32.start.end [1/1] (short) (narrow) %v857_v14, 8 }
 0x325   :  { %v875_v16 = vpop.trf.xlu0 }
 0x326   :  { %892 = vst.msk [vmem:[#allocation9] sm:$0x1] %vm891_vm14, %v875_v16 }
 0x327   :  { %1081 = shalt.err (!%p1078_p0)
}
 0x328   :  { %s1082_s5 = scalar_lea.hbm %s1394_s4, 16 }
 0x329   :  { %p1083_p1 = scmp.ne.s32.totalorder %s1394_s4, %s1082_s5  ;;  %p1086_p2 = scmp.lt.u32.totalorder %s1082_s5, %s1394_s4 }
 0x32b   :  { %p1088_p3 = pnand %p1086_p2, %p1083_p1 }
 0x32d   :  { %1091 = shalt.err (!%p1088_p3)
}
 0x32e   :  { %902 = dma.vmem_to_hbm [thread:$0]  %s900_s26, 16, %s1394_s4, [#allocation5]  }
 0x32f   :  { %1096 = dma.done.wait [#allocation5], 16  }
 0x330   :  { %1097 = vsyncadd [#allocation5], 4294967280 }
 0x331   :  { %906 = vsyncpa [#allocation4], 1 }
 0x332   :  { %907 = vsyncpa [#allocation7], 1 }
 0x333   :  { %908 = vsyncpa [#allocation5], 1 }

</bundles_post_ra>
